<compile_context>
chip_gen: v7x
topology: tpu7x:2x2x1
jax: 0.10.0
libtpu: 0.0.40
codegen_flags: <defaults>
</compile_context>

<pallas_src>
import jax
import jax.numpy as jnp
from jax.experimental import pallas as pl
from jax.experimental.pallas import tpu as pltpu

_NEG_BIG = -1e30  # bias sentinel for padded vocab columns (exp underflows to 0 in f32)


def _round_up(x: int, m: int) -> int:
    return (x + m - 1) // m * m


def _vmem_limit_bytes() -> int:
    """Per-generation scoped-VMEM limit (3/4 of physical, capped at 96 MiB)."""
    phys = None
    try:
        phys = getattr(pltpu.get_tpu_info(), "vmem_capacity_bytes", None)
    except Exception:
        phys = None
    if not phys:
        phys = 64 * 1024 * 1024  # conservative fallback: v7x floor
    return min(int(phys) * 3 // 4, 96 * 1024 * 1024)


def _choose_vocab_contract_tiles(E: int, V: int, budget: int):
    tv = min(1024, _round_up(V, 128))
    tk = _round_up(E, 128)          # prefer full-E contraction: nk == 1, no K loop
    # keep the double-buffered bf16 weight tile under ~1/3 of the budget
    while 2 * tk * tv * 2 > budget // 3 and tk > 128:
        tk = _round_up(tk // 2, 128)
    while 2 * tk * tv * 2 > budget // 3 and tv > 128:
        tv = _round_up(tv // 2, 128)
    return tv, tk


def _choose_row_tile(M: int, Vp: int, tk: int, tv: int, budget: int, out_bytes: int):
    def vmem_need(tm):
        return (tm * Vp * 4                 # row-resident f32 logits scratch
                + 2 * tm * Vp * out_bytes   # double-buffered output block
                + 2 * tm * tk * 2           # bf16 activation tiles
                + 2 * tk * tv * 2           # bf16 weight tiles
                + 2 * tv * 4                # bias tiles
                + 8 * tm * 4)               # m / l scratch
    tm = min(512, _round_up(M, 8))
    while tm > 8 and vmem_need(tm) > budget:
        tm = _round_up(tm // 2, 8)
    # v7x megacore: the "parallel" row axis needs >= 2 blocks to use both TCs
    if _round_up(M, tm) // tm < 2 and tm > 8:
        tm = _round_up(tm // 2, 8)
    assert vmem_need(tm) <= budget, (
        "vocab too large for the row-resident single-pass kernel "
        "(see TODO: two-pass recompute variant)")
    return tm


def prepare_output_layer_params(weight_ve, bias_v):
    """One-time (init-style) prep of nn.Linear params.

    weight_ve: [V, E] (PyTorch nn.Linear layout), bias_v: [V].
    Transposed to (E, V), cast to bf16 (MXU-native) and padded to tile
    multiples ONCE, outside the per-call hot path.
    """
    V, E = weight_ve.shape
    budget = _vmem_limit_bytes() - 2 * 1024 * 1024
    tv, tk = _choose_vocab_contract_tiles(E, V, budget)
    Ep, Vp = _round_up(E, tk), _round_up(V, tv)
    w_ev = jnp.pad(jnp.asarray(weight_ve).T.astype(jnp.bfloat16),
                   ((0, Ep - E), (0, Vp - V)))
    # padded vocab columns get a huge negative bias -> never affect max / lse
    b = jnp.pad(jnp.asarray(bias_v).astype(jnp.float32).reshape(1, V),
                ((0, 0), (0, Vp - V)), constant_values=_NEG_BIG)
    return {"w_ev": w_ev, "bias": b, "tv": tv, "tk": tk,
            "embed_dim": E, "vocab_size": V}


def _linear_logsoftmax_kernel(x_ref, w_ref, b_ref, o_ref, acc_ref, m_ref, l_ref):
    """Fused (x @ W + b) followed by log_softmax over the vocab axis.

    Grid: (rows i [parallel], vocab j [arbitrary], contraction k [arbitrary]).
    NOTE: the m/l/acc state and its init at (j==0, k==0) rely on the grid
    iteration order (k fastest, j next, i slowest) and on i being the ONLY
    parallel axis.  Do not mark j or k "parallel" or reorder the grid.

    x_ref: (tm, tk) bf16     w_ref: (tk, tv) bf16     b_ref: (1, tv) f32
    o_ref: (tm, Vp)          -- row-resident across (j, k); one HBM write per i
    acc_ref: (nj, tm, tv) f32 -- row-resident logits for the whole vocab sweep
    m_ref / l_ref: (tm, 1) f32 -- online (flash-style) max / sum-exp
    """
    j = pl.program_id(1)
    k = pl.program_id(2)
    nj = pl.num_programs(1)
    nk = pl.num_programs(2)

    @pl.when((j == 0) & (k == 0))
    def _():
        m_ref[...] = jnp.full_like(m_ref, -jnp.inf)
        l_ref[...] = jnp.zeros_like(l_ref)

    partial = jnp.dot(x_ref[...], w_ref[...], preferred_element_type=jnp.float32)

    @pl.when(k == 0)
    def _():
        acc_ref[j] = partial            # first K step: overwrite (no zero-init pass)

    @pl.when(k > 0)
    def _():
        acc_ref[j] = acc_ref[j] + partial

    @pl.when(k == nk - 1)
    def _():
        logits = acc_ref[j] + b_ref[...]            # fold bias in f32
        acc_ref[j] = logits
        m_prev = m_ref[...]
        m_new = jnp.maximum(m_prev, jnp.max(logits, axis=-1, keepdims=True))
        l_ref[...] = (l_ref[...] * jnp.exp(m_prev - m_new)
                      + jnp.sum(jnp.exp(logits - m_new), axis=-1, keepdims=True))
        m_ref[...] = m_new

    @pl.when((j == nj - 1) & (k == nk - 1))
    def _():
        # The whole row-block of logits is VMEM-resident: normalize in place
        # and write the final log-probs exactly once (no logits HBM round trip).
        lse = m_ref[...] + jnp.log(l_ref[...])
        n_vocab_tiles, _, tv = acc_ref.shape
        for jj in range(n_vocab_tiles):             # static unroll, static slices
            o_ref[:, jj * tv:(jj + 1) * tv] = (acc_ref[jj] - lse).astype(o_ref.dtype)


def output_layer(x, params, *, out_dtype=jnp.float32):
    """log_softmax(x @ W^T + b, axis=-1) in a single fused Pallas pass.

    x: [B, S, E] float32; params: from prepare_output_layer_params().
    out_dtype=f32 matches the PyTorch module; bf16 halves HBM traffic on the
    [M, V] output (all accumulation / LSE math stays f32 either way).
    """
    B, S, E_in = x.shape
    E, V = params["embed_dim"], params["vocab_size"]
    assert E_in == E, "weight/embedding dim mismatch"
    tv, tk = params["tv"], params["tk"]
    w, b = params["w_ev"], params["bias"]
    Ep, Vp = w.shape
    M = B * S

    vmem_limit = _vmem_limit_bytes()
    out_bytes = jnp.dtype(out_dtype).itemsize
    tm = _choose_row_tile(M, Vp, tk, tv, vmem_limit - 2 * 1024 * 1024, out_bytes)
    Mp = _round_up(M, tm)

    # Only the (small) activation tensor is cast/padded per call.
    x2 = x.reshape(M, E).astype(jnp.bfloat16)
    x2 = jnp.pad(x2, ((0, Mp - M), (0, Ep - E)))     # zero pad: no effect on dot

    nj, nk = Vp // tv, Ep // tk
    grid = (Mp // tm, nj, nk)

    cost = pl.CostEstimate(
        flops=2 * M * E * V,
        transcendentals=M * V,                          # exp in the online LSE
        bytes_accessed=int((Mp // tm) * Ep * Vp * 2     # weight streamed per row block
                           + nj * Mp * Ep * 2           # activations per vocab tile
                           + Mp * Vp * out_bytes        # single output write
                           + Vp * 4),
    )

    out = pl.pallas_call(
        _linear_logsoftmax_kernel,
        out_shape=jax.ShapeDtypeStruct((Mp, Vp), out_dtype),
        grid_spec=pltpu.PrefetchScalarGridSpec(
            num_scalar_prefetch=0,
            grid=grid,
            in_specs=[
                pl.BlockSpec((tm, tk), lambda i, j, k: (i, k)),   # activations
                pl.BlockSpec((tk, tv), lambda i, j, k: (k, j)),   # weight tile
                pl.BlockSpec((1, tv), lambda i, j, k: (0, j)),    # bias tile
            ],
            # Block index constant across (j, k): the output block stays in
            # VMEM for the whole vocab sweep, written back once per row block.
            out_specs=pl.BlockSpec((tm, Vp), lambda i, j, k: (i, 0)),
            scratch_shapes=[
                pltpu.VMEM((nj, tm, tv), jnp.float32),   # row-resident f32 logits
                pltpu.VMEM((tm, 1), jnp.float32),        # running max
                pltpu.VMEM((tm, 1), jnp.float32),        # running sum-exp
            ],
        ),
        compiler_params=pltpu.CompilerParams(
            # i is the only parallel axis; j/k carry online-LSE state and MUST
            # stay "arbitrary" (see kernel docstring).
            dimension_semantics=("parallel", "arbitrary", "arbitrary"),
            vmem_limit_bytes=vmem_limit,
        ),
        cost_estimate=cost,
    )(x2, w, b)

    return out[:M, :V].reshape(B, S, V)


if __name__ == "__main__":
    batch, seq, embed, vocab = 2, 8, 32, 256

    key = jax.random.PRNGKey(0)
    kx, kw, kb = jax.random.split(key, 3)

    # deterministic synthetic parameters (match nn.Linear shapes: W [V,E], b [V])
    x = jax.random.normal(kx, (batch, seq, embed), dtype=jnp.float32)
    bound = 1.0 / (embed ** 0.5)
    weight = jax.random.uniform(kw, (vocab, embed), minval=-bound, maxval=bound,
                                dtype=jnp.float32)
    bias = jax.random.uniform(kb, (vocab,), minval=-bound, maxval=bound,
                              dtype=jnp.float32)

    # One-time parameter prep (transpose / bf16 cast / pad) outside the hot path.
    params = prepare_output_layer_params(weight, bias)

    out = output_layer(x, params)
    out = jax.block_until_ready(out)

    # reference in plain JAX with the same bf16 operand rounding, f32 math
    xb = x.astype(jnp.bfloat16).astype(jnp.float32)
    wb = weight.astype(jnp.bfloat16).astype(jnp.float32)
    ref = jax.nn.log_softmax(xb @ wb.T + bias, axis=-1)

    assert out.shape == (batch, seq, vocab)
    assert jnp.allclose(out, ref, atol=2e-3, rtol=2e-3), "mismatch vs reference"

    print("KERNEL_OK")
</pallas_src>

<mosaic_0001>
module attributes {stable_mosaic.version = 11 : i64} {
  func.func @_linear_logsoftmax_kernel(%arg0: i32, %arg1: i32, %arg2: i32, %arg3: memref<8x128xbf16, #tpu.memory_space<vmem>>, %arg4: memref<128x256xbf16, #tpu.memory_space<vmem>>, %arg5: memref<1x256xf32, #tpu.memory_space<vmem>>, %arg6: memref<8x256xf32, #tpu.memory_space<vmem>>, %arg7: memref<1x8x256xf32, #tpu.memory_space<vmem>>, %arg8: memref<8x1xf32, #tpu.memory_space<vmem>>, %arg9: memref<8x1xf32, #tpu.memory_space<vmem>>) attributes {dimension_semantics = [#tpu.dimension_semantics<parallel>, #tpu.dimension_semantics<arbitrary>, #tpu.dimension_semantics<arbitrary>], iteration_bounds = array<i64: 2, 1, 1>, scalar_prefetch = 0 : i64, scratch_operands = 3 : i64, tpu.core_type = #tpu.core_type<tc>, window_params = [{transform_indices = @transform_0, window_bounds = array<i64: 8, 128>}, {transform_indices = @transform_1, window_bounds = array<i64: 128, 256>}, {transform_indices = @transform_2, window_bounds = array<i64: 1, 256>}, {transform_indices = @transform_3, window_bounds = array<i64: 8, 256>}]} {
    %c0_i32 = arith.constant 0 : i32
    %0 = arith.cmpi eq, %arg1, %c0_i32 : i32
    %c0_i32_0 = arith.constant 0 : i32
    %1 = arith.cmpi eq, %arg2, %c0_i32_0 : i32
    %2 = arith.andi %0, %1 : i1
    %3 = arith.extui %2 : i1 to i32
    %c0_i32_1 = arith.constant 0 : i32
    %4 = arith.cmpi ne, %3, %c0_i32_1 : i32
    scf.if %4 {
      %cst_14 = arith.constant 0xFF800000 : f32
      %22 = vector.broadcast %cst_14 : f32 to vector<8x1xf32>
      %c0_15 = arith.constant 0 : index
      %c0_16 = arith.constant 0 : index
      %23 = vector.load %arg8[%c0_15, %c0_16] : memref<8x1xf32, #tpu.memory_space<vmem>>, vector<8x1xf32>
      tpu.vector_store %arg8[%c0_15, %c0_16], %22 {strides = array<i32>} : memref<8x1xf32, #tpu.memory_space<vmem>>, vector<8x1xf32>,
      %cst_17 = arith.constant 0.000000e+00 : f32
      %24 = vector.broadcast %cst_17 : f32 to vector<8x1xf32>
      %c0_18 = arith.constant 0 : index
      %c0_19 = arith.constant 0 : index
      %25 = vector.load %arg9[%c0_18, %c0_19] : memref<8x1xf32, #tpu.memory_space<vmem>>, vector<8x1xf32>
      tpu.vector_store %arg9[%c0_18, %c0_19], %24 {strides = array<i32>} : memref<8x1xf32, #tpu.memory_space<vmem>>, vector<8x1xf32>,
    } else {
    }
    %c0 = arith.constant 0 : index
    %c0_2 = arith.constant 0 : index
    %5 = vector.load %arg3[%c0, %c0_2] : memref<8x128xbf16, #tpu.memory_space<vmem>>, vector<8x128xbf16>
    %c0_3 = arith.constant 0 : index
    %c0_4 = arith.constant 0 : index
    %6 = vector.load %arg4[%c0_3, %c0_4] : memref<128x256xbf16, #tpu.memory_space<vmem>>, vector<128x256xbf16>
    %cst = arith.constant dense<0.000000e+00> : vector<8x256xf32>
    %7 = tpu.matmul %5, %6, %cst {dimension_numbers = #tpu.dot_dimension_numbers<[1], [0], [0], [1], [0, 0, 1, 1], [], []>} : vector<8x128xbf16>, vector<128x256xbf16>, vector<8x256xf32> -> vector<8x256xf32>
    %c0_i32_5 = arith.constant 0 : i32
    %8 = arith.cmpi eq, %arg2, %c0_i32_5 : i32
    %9 = arith.extui %8 : i1 to i32
    %c0_i32_6 = arith.constant 0 : i32
    %10 = arith.cmpi ne, %9, %c0_i32_6 : i32
    scf.if %10 {
      %22 = arith.index_cast %arg1 : i32 to index
      %c0_14 = arith.constant 0 : index
      %c0_15 = arith.constant 0 : index
      %23 = vector.load %arg7[%22, %c0_14, %c0_15] : memref<1x8x256xf32, #tpu.memory_space<vmem>>, vector<1x8x256xf32>
      %24 = vector.shape_cast %23 : vector<1x8x256xf32> to vector<8x256xf32>
      %25 = vector.shape_cast %7 : vector<8x256xf32> to vector<1x8x256xf32>
      tpu.vector_store %arg7[%22, %c0_14, %c0_15], %25 {strides = array<i32>} : memref<1x8x256xf32, #tpu.memory_space<vmem>>, vector<1x8x256xf32>,
    } else {
    }
    %c0_i32_7 = arith.constant 0 : i32
    %11 = arith.cmpi sgt, %arg2, %c0_i32_7 : i32
    %12 = arith.extui %11 : i1 to i32
    %c0_i32_8 = arith.constant 0 : i32
    %13 = arith.cmpi ne, %12, %c0_i32_8 : i32
    scf.if %13 {
      %22 = arith.index_cast %arg1 : i32 to index
      %c0_14 = arith.constant 0 : index
      %c0_15 = arith.constant 0 : index
      %23 = vector.load %arg7[%22, %c0_14, %c0_15] : memref<1x8x256xf32, #tpu.memory_space<vmem>>, vector<1x8x256xf32>
      %24 = vector.shape_cast %23 : vector<1x8x256xf32> to vector<8x256xf32>
      %25 = arith.addf %24, %7 : vector<8x256xf32>
      %26 = arith.index_cast %arg1 : i32 to index
      %c0_16 = arith.constant 0 : index
      %c0_17 = arith.constant 0 : index
      %27 = vector.load %arg7[%26, %c0_16, %c0_17] : memref<1x8x256xf32, #tpu.memory_space<vmem>>, vector<1x8x256xf32>
      %28 = vector.shape_cast %27 : vector<1x8x256xf32> to vector<8x256xf32>
      %29 = vector.shape_cast %25 : vector<8x256xf32> to vector<1x8x256xf32>
      tpu.vector_store %arg7[%26, %c0_16, %c0_17], %29 {strides = array<i32>} : memref<1x8x256xf32, #tpu.memory_space<vmem>>, vector<1x8x256xf32>,
    } else {
    }
    %c0_i32_9 = arith.constant 0 : i32
    %14 = arith.cmpi eq, %arg2, %c0_i32_9 : i32
    %15 = arith.extui %14 : i1 to i32
    %c0_i32_10 = arith.constant 0 : i32
    %16 = arith.cmpi ne, %15, %c0_i32_10 : i32
    scf.if %16 {
      %22 = arith.index_cast %arg1 : i32 to index
      %c0_14 = arith.constant 0 : index
      %c0_15 = arith.constant 0 : index
      %23 = vector.load %arg7[%22, %c0_14, %c0_15] : memref<1x8x256xf32, #tpu.memory_space<vmem>>, vector<1x8x256xf32>
      %24 = vector.shape_cast %23 : vector<1x8x256xf32> to vector<8x256xf32>
      %c0_16 = arith.constant 0 : index
      %c0_17 = arith.constant 0 : index
      %25 = vector.load %arg5[%c0_16, %c0_17] : memref<1x256xf32, #tpu.memory_space<vmem>>, vector<1x256xf32>
      %26 = vector.broadcast %25 : vector<1x256xf32> to vector<8x256xf32>
      %27 = arith.addf %24, %26 : vector<8x256xf32>
      %28 = arith.index_cast %arg1 : i32 to index
      %c0_18 = arith.constant 0 : index
      %c0_19 = arith.constant 0 : index
      %29 = vector.load %arg7[%28, %c0_18, %c0_19] : memref<1x8x256xf32, #tpu.memory_space<vmem>>, vector<1x8x256xf32>
      %30 = vector.shape_cast %29 : vector<1x8x256xf32> to vector<8x256xf32>
      %31 = vector.shape_cast %27 : vector<8x256xf32> to vector<1x8x256xf32>
      tpu.vector_store %arg7[%28, %c0_18, %c0_19], %31 {strides = array<i32>} : memref<1x8x256xf32, #tpu.memory_space<vmem>>, vector<1x8x256xf32>,
      %c0_20 = arith.constant 0 : index
      %c0_21 = arith.constant 0 : index
      %32 = vector.load %arg8[%c0_20, %c0_21] : memref<8x1xf32, #tpu.memory_space<vmem>>, vector<8x1xf32>
      %cst_22 = arith.constant dense<0xFF800000> : vector<8xf32>
      %33 = vector.multi_reduction <maximumf>, %27, %cst_22 [1] : vector<8x256xf32> to vector<8xf32>
      %34 = vector.shape_cast %33 : vector<8xf32> to vector<8x1xf32>
      %35 = arith.maximumf %32, %34 : vector<8x1xf32>
      %c0_23 = arith.constant 0 : index
      %c0_24 = arith.constant 0 : index
      %36 = vector.load %arg9[%c0_23, %c0_24] : memref<8x1xf32, #tpu.memory_space<vmem>>, vector<8x1xf32>
      %37 = arith.subf %32, %35 : vector<8x1xf32>
      %38 = math.exp %37 : vector<8x1xf32>
      %39 = arith.mulf %36, %38 : vector<8x1xf32>
      %40 = vector.broadcast %35 : vector<8x1xf32> to vector<8x256xf32>
      %41 = arith.subf %27, %40 : vector<8x256xf32>
      %42 = math.exp %41 : vector<8x256xf32>
      %cst_25 = arith.constant dense<0.000000e+00> : vector<8xf32>
      %43 = vector.multi_reduction <add>, %42, %cst_25 [1] : vector<8x256xf32> to vector<8xf32>
      %44 = vector.shape_cast %43 : vector<8xf32> to vector<8x1xf32>
      %45 = arith.addf %39, %44 : vector<8x1xf32>
      %c0_26 = arith.constant 0 : index
      %c0_27 = arith.constant 0 : index
      %46 = vector.load %arg9[%c0_26, %c0_27] : memref<8x1xf32, #tpu.memory_space<vmem>>, vector<8x1xf32>
      tpu.vector_store %arg9[%c0_26, %c0_27], %45 {strides = array<i32>} : memref<8x1xf32, #tpu.memory_space<vmem>>, vector<8x1xf32>,
      %c0_28 = arith.constant 0 : index
      %c0_29 = arith.constant 0 : index
      %47 = vector.load %arg8[%c0_28, %c0_29] : memref<8x1xf32, #tpu.memory_space<vmem>>, vector<8x1xf32>
      tpu.vector_store %arg8[%c0_28, %c0_29], %35 {strides = array<i32>} : memref<8x1xf32, #tpu.memory_space<vmem>>, vector<8x1xf32>,
    } else {
    }
    %c0_i32_11 = arith.constant 0 : i32
    %17 = arith.cmpi eq, %arg1, %c0_i32_11 : i32
    %c0_i32_12 = arith.constant 0 : i32
    %18 = arith.cmpi eq, %arg2, %c0_i32_12 : i32
    %19 = arith.andi %17, %18 : i1
    %20 = arith.extui %19 : i1 to i32
    %c0_i32_13 = arith.constant 0 : i32
    %21 = arith.cmpi ne, %20, %c0_i32_13 : i32
    scf.if %21 {
      %c0_14 = arith.constant 0 : index
      %c0_15 = arith.constant 0 : index
      %22 = vector.load %arg8[%c0_14, %c0_15] : memref<8x1xf32, #tpu.memory_space<vmem>>, vector<8x1xf32>
      %c0_16 = arith.constant 0 : index
      %c0_17 = arith.constant 0 : index
      %23 = vector.load %arg9[%c0_16, %c0_17] : memref<8x1xf32, #tpu.memory_space<vmem>>, vector<8x1xf32>
      %24 = math.log %23 : vector<8x1xf32>
      %25 = arith.addf %22, %24 : vector<8x1xf32>
      %c0_18 = arith.constant 0 : index
      %c0_19 = arith.constant 0 : index
      %c0_20 = arith.constant 0 : index
      %26 = vector.load %arg7[%c0_18, %c0_19, %c0_20] : memref<1x8x256xf32, #tpu.memory_space<vmem>>, vector<1x8x256xf32>
      %27 = vector.shape_cast %26 : vector<1x8x256xf32> to vector<8x256xf32>
      %28 = vector.broadcast %25 : vector<8x1xf32> to vector<8x256xf32>
      %29 = arith.subf %27, %28 : vector<8x256xf32>
      %c0_21 = arith.constant 0 : index
      %c0_22 = arith.constant 0 : index
      %30 = vector.load %arg6[%c0_21, %c0_22] : memref<8x256xf32, #tpu.memory_space<vmem>>, vector<8x256xf32>
      tpu.vector_store %arg6[%c0_21, %c0_22], %29 {strides = array<i32>} : memref<8x256xf32, #tpu.memory_space<vmem>>, vector<8x256xf32>,
    } else {
    }
    return
  }
  func.func @transform_0(%arg0: i32, %arg1: i32, %arg2: i32) -> (i32, i32) {
    %c0_i32 = arith.constant 0 : i32
    return %arg0, %arg2 : i32, i32
  }
  func.func @transform_1(%arg0: i32, %arg1: i32, %arg2: i32) -> (i32, i32) {
    %c0_i32 = arith.constant 0 : i32
    return %arg2, %arg1 : i32, i32
  }
  func.func @transform_2(%arg0: i32, %arg1: i32, %arg2: i32) -> (i32, i32) {
    %c0_i32 = arith.constant 0 : i32
    %c0_i32_0 = arith.constant 0 : i32
    return %c0_i32, %arg1 : i32, i32
  }
  func.func @transform_3(%arg0: i32, %arg1: i32, %arg2: i32) -> (i32, i32) {
    %c0_i32 = arith.constant 0 : i32
    %c0_i32_0 = arith.constant 0 : i32
    return %arg0, %c0_i32 : i32, i32
  }
}

</mosaic_0001>

<bundles_post_ra>
// kernel: tpu_custom_call.1
= control target key start
LH: loop header
LB: loop body
LE: loop exit
PB: predicated region body
PF: predicated region fallthrough
CT: control target
= control target key end

     0   :  { %8 = vsyncpa [#allocation6], 0  ;;  %s1171_s0 = inlined_call_operand.hbm [shape: bf16[16,128], index: 0, kind: input, shape index: {}]   ;;  %s1172_s1 = inlined_call_operand.hbm [shape: bf16[128,256], index: 1, kind: input, shape index: {}]   ;;  %s1173_s2 = inlined_call_operand.vmem [shape: f32[1,256], index: 2, kind: input, shape index: {}]   ;;  %s1174_s3 = inlined_call_operand.hbm [shape: f32[16,256], index: 3, kind: output, shape index: {}]  }
   0x1   :  { %10 = vsyncpa [#allocation6 + $0x1], 0 }
   0x2   :  { %11 = vsyncpa [#allocation9], 0 }
   0x3   :  { %12 = vsyncpa [#allocation7], 0 }
   0x4   :  { %14 = vsyncpa [#allocation7 + $0x1], 0  ;;  %s946_s12 = smov 0   ;;  %s948_s13 = smov 0  }
   0x5   :  { %s950_s14 = smov 0   ;;  %s952_s15 = smov 0  }
   0x6   :  { %s954_s16 = smov 0   ;;  %s956_s17 = smov 0  }
   0x7 LB: > { %s626_s18 = sadd.s32 4294967295, %s916_s17   ;;  %s627_s19 = sadd.s32 4294967294, %s916_s17   ;;  %s916_s17 = sphi %s956_s17, %s20_s17   ;;  %s912_s16 = sphi %s954_s16, %s1198_s16   ;;  %s908_s15 = sphi %s952_s15, %s1197_s15   ;;  %s904_s14 = sphi %s950_s14, %s1196_s14   ;;  %s900_s13 = sphi %s948_s13, %s1195_s13   ;;  %s896_s12 = sphi %s946_s12, %s1194_s12  }
   0x8   : > { %p61_p0 = scmp.ne.s32.totalorder %s900_s13, %s896_s12  ;;  %p980_p1 = scmp.eq.s32.totalorder %s626_s18, 0 }
   0x9   : > { %p984_p2 = scmp.eq.s32.totalorder %s626_s18, 1  ;;  %p145_p3 = scmp.eq.s32.totalorder %s627_s19, 1 }
   0xa   : > { %s1179_s20 = scalar_select %p980_p1, 1, 0 }
   0xb   : > { %s1180_s21 = scalar_select %p984_p2, 1, 0 }
   0xc   : > { %p990_p4 = por %p980_p1, %p61_p0  ;;  %p628_p5 = scmp.ge.s32.totalorder %s916_s17, 1 }
   0xd   : > { %p995_p6 = por %p145_p3, %p61_p0  ;;  %p152_p7 = scmp.lt.s32.totalorder %s916_s17, 3 }
   0xe   : > { %s1181_s22 = scalar_select %p990_p4, 1, 0 }
   0xf   : > { %s1182_s23 = scalar_select %p995_p6, 1, 0 }
  0x10   : > { %p1000_p8 = pnand %p628_p5, %p152_p7  ;;  %s918_s25 = smov [#allocation8]  }
  0x11   : > { %s170_s26 = sshll.u32 %s918_s25, 4  ;;  %s39_s28 = sadd.s32 1, %s912_s16  ;;  %s171_s26 = int_to_ptr.vmem [resolvable:$true] %s170_s26 }
  0x12   : > { %s1183_s24 = scalar_select %p1000_p8, 1, 0 }
  0x13   : > { %p668_p9 = pneg %p1000_p8  ;;  %s772_s4 = scalar_lea.hbm %s1172_s1, 2048 }
  0x14   : > { %p773_p12 = scmp.ne.s32.totalorder %s1172_s1, %s772_s4  ;;  %p779_p5 = scmp.lt.u32.totalorder %s772_s4, %s1172_s1 }
  0x15   : > { %p1009_p11 = pnand %p668_p9, %p980_p1 }
  0x17   : > { %p774_p13 = pneg %p1009_p11 }
  0x19   : > { %p775_p0 = pnand %p774_p13, %p773_p12 }
  0x1b   : > { %p776_p3 = pneg %p775_p0 }
  0x1d   : > { %p781_p7 = pnand %p779_p5, %p776_p3 }
  0x1f   : > { %784 = shalt.err (!%p781_p7)
}
  0x20   : > { %s785_s9 = scalar_lea.vmem %s171_s26, 2048  ;;  %p793_p1 = scmp.lt.s32.totalorder %s171_s26, %s171_s26 }
  0x21   : > { %p786_p9 = scmp.ne.s32.totalorder %s171_s26, %s785_s9  ;;  %p794_p4 = scmp.lt.s32.totalorder %s785_s9, %s785_s9 }
  0x23   : > { %p788_p10 = pnand %p786_p9, %p774_p13  ;;  %p795_p8 = por %p794_p4, %p793_p1 }
  0x25   : > { %p789_p6 = pneg %p788_p10 }
  0x27   : > { %p796_p2 = pnand %p795_p8, %p789_p6 }
  0x29   : > { %799 = shalt.err (!%p796_p2)
}
  0x2a   : > { %s919_s10 = smov 128   ;;  %s920_s11 = smov 8  }
  0x2b   : > { %671 = dma.hbm_to_vmem [thread:$0]  (!%p1009_p11), %s1172_s1, 2048, %s171_s26, [#allocation9], %s919_s10, %s919_s10, %s920_s11  }
  0x2c   : > { %p41_p1 = scmp.ge.s32.totalorder %s39_s28, 2  ;;  %s48_s25 = sadd.s32 1, %s904_s14 }
  0x2d   : > { %p55_p2 = scmp.ne.s32.totalorder %s904_s14, %s900_s13  ;;  %p56_p4 = scmp.eq.s32.totalorder %s916_s17, 0 }
  0x2e   : > { %s1200_s28 = smov (%p41_p1, %s39_s28), 0  ;;  %p1186_p8 = scmp.ne.s32.totalorder %s1180_s21, 0 }
  0x2f   : > { %p1036_p6 = por %p56_p4, %p55_p2  ;;  %s43_s27 = ssub.s32 %s912_s16, %s1200_s28 }
  0x30   : > { %p1042_p10 = por %p1186_p8, %p55_p2  ;;  %p681_p12 = scmp.lt.s32.totalorder %s916_s17, 2 }
  0x31   : > { %p46_p11 = scmp.eq.s32.totalorder %s43_s27, 0  ;;  %s192_s26 = sand.u32 1, %s904_s14  }
  0x32   : > { %s632_s4 = sshll.u32 %s192_s26, 2  ;;  %s633_s6 = sshll.u32 %s912_s16, 6 }
  0x33   : > { %s1051_s5 = scalar_select %p46_p11, %s904_s14, %s48_s25  }
  0x34   : > { %s1057_s9 = scalar_lea.hbm %s1171_s0, %s633_s6  ;;  %s196_s21 = scalar_lea.vmem [#allocation5], %s632_s4 }
  0x35   : > { %s204_s10 = sshll.u32 %s196_s21, 4  ;;  %p1063_p13 = pnand %p681_p12, %p1036_p6  ;;  %s1059_s10 = int_to_ptr.vmem [resolvable:$true] %s204_s10 }
  0x36   : > { %s193_s18 = scalar_lea.sflag [#allocation6], %s192_s26  ;;  %s800_s19 = scalar_lea.hbm %s1057_s9, 64 }
  0x37   : > { %p801_p0 = scmp.ne.s32.totalorder %s1057_s9, %s800_s19  ;;  %p802_p3 = pneg %p1063_p13 }
  0x38   : > { %s805_s4 = scalar_lea.hbm %s1171_s0, 128  ;;  %p806_p9 = scmp.lt.u32.totalorder %s1057_s9, %s1171_s0 }
  0x39   : > { %p803_p5 = pnand %p802_p3, %p801_p0  ;;  %p807_p1 = scmp.lt.u32.totalorder %s805_s4, %s800_s19 }
  0x3a   : > { %p809_p4 = scmp.lt.u32.totalorder %s800_s19, %s1057_s9 }
  0x3b   : > { %p804_p7 = pneg %p803_p5  ;;  %p808_p2 = por %p807_p1, %p806_p9 }
  0x3d   : > { %p810_p6 = por %p809_p4, %p808_p2 }
  0x3f   : > { %p811_p8 = pnand %p810_p6, %p804_p7 }
  0x41   : > { %814 = shalt.err (!%p811_p8)
}
  0x42   : > { %s815_s26 = scalar_lea.vmem %s1059_s10, 64  ;;  %s921_s7 = smov [#allocation5]  }
  0x43   : > { %p816_p12 = scmp.ne.s32.totalorder %s1059_s10, %s815_s26  ;;  %s820_s8 = sshll.u32 %s921_s7, 4  ;;  %s821_s8 = int_to_ptr.vmem [resolvable:$false] %s820_s8 }
  0x44   : > { %s822_s21 = scalar_lea.vmem %s821_s8, 128  ;;  %p823_p5 = scmp.lt.s32.totalorder %s1059_s10, %s821_s8 }
  0x45   : > { %p818_p11 = pnand %p816_p12, %p802_p3  ;;  %p824_p9 = scmp.lt.s32.totalorder %s822_s21, %s815_s26 }
  0x47   : > { %p819_p0 = pneg %p818_p11  ;;  %p825_p1 = por %p824_p9, %p823_p5 }
  0x49   : > { %p826_p2 = pnand %p825_p1, %p819_p0 }
  0x4b   : > { %829 = shalt.err (!%p826_p2)
}
  0x4c   : > { %675 = dma.hbm_to_vmem [thread:$0]  (!%p1063_p13), %s1057_s9, 64, %s1059_s10, %s193_s18  }
  0x4d   : > { %p1189_p7 = scmp.ne.s32.totalorder %s1183_s24, 0 }
  0x4e   : > { %s1095_s19 = sand.u32 (!%p1189_p7), 1, %s900_s13   ;;  %p1190_p3 = scmp.ne.s32.totalorder (!%p1189_p7), %s1181_s22, 0 }
  0x4f   : > { %213 = sbr.rel (%p1189_p7) target bundleno = 942 (0x3ae), region = 32  ;;  %s635_s25 = sshll.u32 (!%p1189_p7), %s1095_s19, 2 }
  0x50   : > { %s216_s27 = scalar_lea.sflag (!%p1189_p7), [#allocation6], %s1095_s19  ;;  %s1099_s4 = scalar_lea.vmem (!%p1189_p7), [#allocation5], %s635_s25 }
  0x56   : > { %883 = dma.done.wait (%p1190_p3), %s216_s27, 64  }
  0x57   : > { %885 = vsyncadd (%p1190_p3), %s216_s27, 4294967232  ;;  %p1191_p13 = scmp.ne.s32.totalorder %s1179_s20, 0 }
  0x59   : > { %887 = dma.done.wait (%p1191_p13), [#allocation9], 2048  }
  0x5a   : > { %889 = vsyncadd (%p1191_p13), [#allocation9], 4294965248  ;;  %v922_v0 = vmov 0   ;;  %v740_v1 = vld [vmem:[#allocation8 + $0x4] ss:$8 sps:$4 sm:$0xff]   ;;  %vm264_vm0 = vcmask 7168   ;;  %v436_v19 = vlaneseq }
  0x5b   : > { %396 = vmatprep.mubr.bf16.mxu0 %v922_v0  ;;  %738 = vset.pattern.permute.xlu0 %v922_v0  ;;  %v742_v2 = vld [vmem:[#allocation8] ss:$8 sps:$4 sm:$0xff]   ;;  %v743_v3 = vld [vmem:[#allocation8 + $0x14] ss:$8 sps:$4 sm:$0xff]   ;;  %v745_v4 = vld [vmem:[#allocation8 + $0x10] ss:$8 sps:$4 sm:$0xff]  }
  0x5c   : > { %739 = vset.pattern.permute.xlu1 %v922_v0  ;;  %364 = vmatprep.subr.bf16.mxu0 %v740_v1  ;;  %v746_v5 = vld [vmem:[#allocation8 + $0x24] ss:$8 sps:$4 sm:$0xff]   ;;  %v748_v6 = vld [vmem:[#allocation8 + $0x20] ss:$8 sps:$4 sm:$0xff]   ;;  %v749_v7 = vld [vmem:[#allocation8 + $0x34] ss:$8 sps:$4 sm:$0xff]  }
  0x5d   : > { %365 = vmatpush1.bf16.msra.mxu0 %v742_v2  ;;  %v751_v8 = vld [vmem:[#allocation8 + $0x30] ss:$8 sps:$4 sm:$0xff]   ;;  %v752_v9 = vld [vmem:[#allocation8 + $0x44] ss:$8 sps:$4 sm:$0xff]   ;;  %v754_v10 = vld [vmem:[#allocation8 + $0x40] ss:$8 sps:$4 sm:$0xff]  }
  0x5e   : > { %366 = vmatprep.subr.bf16.mxu0 %v743_v3  ;;  %v755_v11 = vld [vmem:[#allocation8 + $0x54] ss:$8 sps:$4 sm:$0xff]   ;;  %v757_v12 = vld [vmem:[#allocation8 + $0x50] ss:$8 sps:$4 sm:$0xff]   ;;  %v758_v13 = vld [vmem:[#allocation8 + $0x64] ss:$8 sps:$4 sm:$0xff]  }
  0x5f   : > { %v760_v14 = vld [vmem:[#allocation8 + $0x60] ss:$8 sps:$4 sm:$0xff]   ;;  %v761_v15 = vld [vmem:[#allocation8 + $0x74] ss:$8 sps:$4 sm:$0xff]   ;;  %v763_v16 = vld [vmem:[#allocation8 + $0x70] ss:$8 sps:$4 sm:$0xff]  }
  0x60   : > { %v267_v17 = vld [vmem:[%s1099_s4] sm:$0xf]  ;;  %v923_v18 = vmov -inf   ;;  %v437_v20 = vshrl.u32 %v436_v19, 7  ;;  %v434_v22 = vld [vmem:[%s1173_s2] sm:$0x3] }
  0x61   : > { %367 = vmatpush1.bf16.msra.mxu0 %v745_v4  ;;  %265 = vst.msk [vmem:[#allocation3] sm:$0xff] %vm264_vm0, %v923_v18  ;;  %v924_v33 = vmov 0.0   ;;  %s637_s24 = sshll.u32 %s1095_s19, 4  ;;  %s659_s9 = sshll.u32 %s908_s15, 8 }
  0x62   : > { %368 = vmatprep.subr.bf16.mxu0 %v746_v5  ;;  %v438_v21 = vsub.s32 0, %v437_v20  ;;  %v442_v23 = vsub.s32 1, %v437_v20  ;;  %266 = vst.msk [vmem:[#allocation4] sm:$0xff] %vm264_vm0, %v924_v33  ;;  %s249_s10 = scalar_lea.vmem [#allocation10], %s637_s24  ;;  %s1122_s6 = scalar_lea.hbm %s1174_s3, %s659_s9 }
  0x63   : > { %s511_s11 = sshll.u32 %s249_s10, 4  ;;  %s497_s26 = scalar_lea.sflag [#allocation7], %s1095_s19  ;;  %s1124_s11 = int_to_ptr.vmem [resolvable:$true] %s511_s11 }
  0x64   : > { %v439_v24 = vrot.slane %v434_v22, %v438_v21  ;;  %v443_v25 = vrot.slane %v434_v22, %v442_v23  ;;  %s830_s7 = scalar_lea.vmem %s1124_s11, 256  ;;  %s925_s15 = smov [#allocation10]  }
  0x65   : > { %369 = vmatpush1.bf16.msra.mxu0 %v748_v6  ;;  %p831_p4 = scmp.ne.s32.totalorder %s1124_s11, %s830_s7  ;;  %s834_s8 = sshll.u32 %s925_s15, 4  ;;  %s835_s8 = int_to_ptr.vmem [resolvable:$false] %s834_s8 }
  0x66   : > { %370 = vmatprep.subr.bf16.mxu0 %v749_v7  ;;  %s836_s21 = scalar_lea.vmem %s835_s8, 512  ;;  %p837_p12 = scmp.lt.s32.totalorder %s1124_s11, %s835_s8 }
  0x67   : > { %p832_p6 = pnand %p831_p4, %p1042_p10  ;;  %p838_p11 = scmp.lt.s32.totalorder %s836_s21, %s830_s7 }
  0x68   : > { %v450_v34 = vld [vmem:[#allocation3] sm:$0xff] }
  0x69   : > { %371 = vmatpush1.bf16.msra.mxu0 %v751_v8  ;;  %v455_v48 = vld [vmem:[#allocation4] sm:$0xff]  ;;  %p833_p8 = pneg %p832_p6  ;;  %p839_p0 = por %p838_p11, %p837_p12 }
  0x6a   : > { %372 = vmatprep.subr.bf16.mxu0 %v752_v9 }
  0x6b   : > { %p840_p5 = pnand %p839_p0, %p833_p8 }
  0x6d   : > { %373 = vmatpush1.bf16.msra.mxu0 %v754_v10 }
  0x6e   : > { %374 = vmatprep.subr.bf16.mxu0 %v755_v11 }
  0x71   : > { %375 = vmatpush1.bf16.msra.mxu0 %v757_v12 }
  0x72   : > { %376 = vmatprep.subr.bf16.mxu0 %v758_v13 }
  0x75   : > { %377 = vmatpush1.bf16.msra.mxu0 %v760_v14 }
  0x76   : > { %378 = vmatprep.subr.bf16.mxu0 %v761_v15 }
  0x79   : > { %379 = vmatpush1.bf16.msra.mxu0 %v763_v16 }
  0x7c   : > { %397 = vmatmul.mubr.bf16.vlgmr.msra.gmra.mrb[0].mxu0 %v267_v17 }
 0x14f   : > { %v398_v26 = vpop.f32.mrb[0].mxu0 }
 0x150   : > { %v446_v27 = vadd.f32 %v439_v24, %v398_v26  ;;  %v400_v28 = vpop.f32.mrb[1].mxu0 }
 0x151   : > { %v447_v29 = vadd.f32 %v443_v25, %v400_v28  ;;  %v402_v30 = vpop.f32.mrb[2].mxu0 }
 0x152   : > { %v403_v31 = vpop.f32.mrb[3].mxu0 }
 0x153   : > { %v451_v32 = vmax.f32 %v446_v27, %v447_v29 }
 0x155   : > { %452 = vmax.xlane.f32.xlu0 %v451_v32 }
 0x1e2   : > { %v453_v35 = vpop.xlane.xlu0 %452 }
 0x1e3   : > { %v454_v36 = vmax.f32 %v450_v34, %v453_v35 }
 0x1e5   : > { %v456_v37 = vsub.f32 %v450_v34, %v454_v36  ;;  %477 = vst.msk [vmem:[#allocation3] sm:$0xff] %vm264_vm0, %v454_v36  ;;  %462 = vperm.xlu0 %738, %v454_v36  }
 0x1e7   : > { %v457_v46 = vmul.f32 1.442695, %v456_v37 }
 0x1ec   : > { %v480_v55 = vld [vmem:[#allocation3] sm:$0xff] }
 0x264   : > { %v463_v38 = vpop.permute.xlu0 %462 }
 0x265   : > { %v465_v39 = vsub.f32 %v446_v27, %v463_v38  ;;  %v466_v40 = vsub.f32 %v447_v29, %v463_v38 }
 0x267   : > { %v467_v41 = vmul.f32 1.442695, %v465_v39  ;;  %v469_v42 = vmul.f32 1.442695, %v466_v40 }
 0x269   : > { %764 = vpow2.f32 %v467_v41 }
 0x26a   : > { %766 = vpow2.f32 %v469_v42 }
 0x26b   : > { %768 = vpow2.f32 %v457_v46 }
 0x273   : > { %v765_v43 = vpop.eup %764 }
 0x274   : > { %v767_v44 = vpop.eup %766 }
 0x275   : > { %v471_v45 = vadd.f32 %v767_v44, %v765_v43  ;;  %v769_v47 = vpop.eup %768 }
 0x276   : > { %v459_v49 = vmul.f32 %v769_v47, %v455_v48 }
 0x277   : > { %472 = vadd.xlane.f32.xlu1 %v471_v45 }
 0x304   : > { %v473_v50 = vpop.xlane.xlu1 %472 }
 0x305   : > { %v474_v51 = vadd.f32 %v473_v50, %v459_v49 }
 0x307   : > { %476 = vst.msk [vmem:[#allocation4] sm:$0xff] %vm264_vm0, %v474_v51 }
 0x30e   : > { %v481_v52 = vld [vmem:[#allocation4] sm:$0xff] }
 0x30f   : > { %770 = vlog2.f32 %v481_v52 }
 0x319   : > { %v771_v53 = vpop.eup %770 }
 0x31a   : > { %v483_v54 = vmul.f32 0.6931472, %v771_v53 }
 0x31c   : > { %v484_v56 = vadd.f32 %v483_v54, %v480_v55 }
 0x31e   : > { %489 = vperm.xlu1 %739, %v484_v56  }
 0x39d   : > { %v490_v57 = vpop.permute.xlu1 %489 }
 0x39e   : > { %v492_v58 = vsub.f32 %v446_v27, %v490_v57  ;;  %v493_v59 = vsub.f32 %v447_v29, %v490_v57 }
 0x3a0   : > { %494 = vst [vmem:[%s249_s10] sm:$0xff] %v492_v58  ;;  %495 = vst [vmem:[%s249_s10 + $0x8] sm:$0xff] %v493_v59 }
 0x3a1   : > { %843 = shalt.err (!%p840_p5)
}
 0x3a2   : > { %s844_s19 = scalar_lea.hbm %s1122_s6, 256  ;;  %s848_s4 = scalar_lea.hbm %s1174_s3, 512 }
 0x3a3   : > { %p845_p9 = scmp.ne.s32.totalorder %s1122_s6, %s844_s19  ;;  %p849_p7 = scmp.lt.u32.totalorder %s1122_s6, %s1174_s3 }
 0x3a4   : > { %p850_p3 = scmp.lt.u32.totalorder %s848_s4, %s844_s19  ;;  %p852_p4 = scmp.lt.u32.totalorder %s844_s19, %s1122_s6 }
 0x3a5   : > { %p846_p1 = pnand %p845_p9, %p1042_p10 }
 0x3a6   : > { %p851_p13 = por %p850_p3, %p849_p7 }
 0x3a7   : > { %p847_p2 = pneg %p846_p1 }
 0x3a8   : > { %p853_p6 = por %p852_p4, %p851_p13 }
 0x3aa   : > { %p854_p8 = pnand %p853_p6, %p847_p2 }
 0x3ac   : > { %857 = shalt.err (!%p854_p8)
}
 0x3ad   : > { %666 = dma.vmem_to_hbm [thread:$0]  (%p1042_p10), %s1124_s11, 256, %s1122_s6, %s497_s26  }
 0x3ae PF: > { %s523_s24 = sand.u32 1, %s896_s12   ;;  %p1192_p12 = scmp.ne.s32.totalorder %s1182_s23, 0 }
 0x3af   : > { %p1193_p11 = scmp.ge.s32.totalorder %s916_s17, 2  ;;  %s524_s9 = scalar_lea.sflag [#allocation7], %s523_s24 }
 0x3b1   : > { %p677_p0 = pnand %p1193_p11, %p1192_p12 }
 0x3b3   : > { %891 = dma.done.wait (!%p677_p0), %s524_s9, 256  }
 0x3b4   : > { %893 = vsyncadd (!%p677_p0), %s524_s9, 4294967040  ;;  %s20_s17 = sadd.s32 1, %s916_s17   ;;  %s1194_s12 = smov %s900_s13 }
 0x3b5   : > { %p17_p5 = scmp.ge.s32.totalorder %s20_s17, 4   ;;  %s1195_s13 = smov %s904_s14 }
 0x3b6   : > { %s1196_s14 = smov %s1051_s5  ;;  %s1197_s15 = smov %s912_s16 }
 0x3b7   : > { %s1198_s16 = smov %s1200_s28  ;;  %19 = sbr.rel (!%p17_p5) target bundleno = 7 (0x7), region = 108 }
 0x3be   :  { %529 = vsyncpa [#allocation6], 1 }
 0x3bf   :  { %531 = vsyncpa [#allocation6 + $0x1], 1 }
 0x3c0   :  { %532 = vsyncpa [#allocation9], 1 }
 0x3c1   :  { %533 = vsyncpa [#allocation7], 1 }
 0x3c2   :  { %535 = vsyncpa [#allocation7 + $0x1], 1 }

</bundles_post_ra>
